<compile_context>
chip_gen: v7x
topology: tpu7x:2x2x1
jax: 0.10.0
libtpu: 0.0.40
codegen_flags: <defaults>
</compile_context>

<pallas_src>
import functools

import jax
import jax.numpy as jnp
from jax.experimental import pallas as pl
from jax.experimental.pallas import tpu as pltpu


def _round_up(x, m):
    return ((x + m - 1) // m) * m


# --------------------------------------------------------------------------------------
# Phase 1 (parallel): batched input projection  xproj = X @ W_ih^T + (b_ih + b_hh)
# --------------------------------------------------------------------------------------
def _input_proj_kernel(x_ref, wih_ref, b_ref, out_ref):
    # x_ref   : (Rtile, E)  flattened (t, b) rows of embeddings
    # wih_ref : (E, 4H)     W_ih^T (resident)
    # b_ref   : (1, 4H)     b_ih + b_hh
    # out_ref : (Rtile, 4H) gate pre-activations (input part)
    out_ref[...] = (
        jnp.dot(x_ref[...], wih_ref[...], preferred_element_type=jnp.float32)
        + b_ref[...])


# --------------------------------------------------------------------------------------
# Phase 2 (sequential): LSTM recurrence over time chunks + final fc
# --------------------------------------------------------------------------------------
def _lstm_recurrence_kernel(xproj_ref, whh_ref, wfc_ref, bfc_ref,
                            logits_ref, hn_ref, cn_ref,
                            h_sc, c_sc,
                            *, hidden_dim, time_chunk, seq_len, padded_len):
    """One grid step == one chunk of `time_chunk` LSTM timesteps.

    xproj_ref : (Tc, B_pad, 4H)  precomputed x@W_ih^T + bias for this chunk
    whh_ref   : (H, 4H)          W_hh^T (resident)
    wfc_ref   : (H, 128)         W_fc^T zero-padded to 128 lanes
    bfc_ref   : (1, 128)         b_fc zero-padded
    logits_ref: (B_pad, 128)     fc(h_T), padded lanes        (written at last chunk)
    hn_ref    : (B_pad, H)       final hidden state           (written at last chunk)
    cn_ref    : (B_pad, H)       final cell state             (written at last chunk)
    h_sc,c_sc : (B_pad, H)       f32 VMEM recurrent carries across chunks
    """
    chunk = pl.program_id(0)
    H = hidden_dim
    needs_mask = padded_len > seq_len  # static Python bool

    @pl.when(chunk == 0)
    def _():
        h_sc[...] = jnp.zeros_like(h_sc)
        c_sc[...] = jnp.zeros_like(c_sc)

    # Hoist loads out of the unrolled time loop.
    whh = whh_ref[...]                       # (H, 4H)
    t_base = chunk * time_chunk

    def step(i, carry):
        h_prev, c_prev = carry
        # Only the recurrent matmul sits on the serialized critical path.
        gates = xproj_ref[i] + jnp.dot(h_prev, whh,
                                       preferred_element_type=jnp.float32)  # (B_pad, 4H)
        i_g = jax.nn.sigmoid(gates[:, 0 * H:1 * H])
        f_g = jax.nn.sigmoid(gates[:, 1 * H:2 * H])
        g_g = jnp.tanh(gates[:, 2 * H:3 * H])
        o_g = jax.nn.sigmoid(gates[:, 3 * H:4 * H])
        c_new = f_g * c_prev + i_g * g_g
        h_new = o_g * jnp.tanh(c_new)
        if needs_mask:
            # Freeze the state on padded timesteps (t >= seq_len).
            valid = (t_base + i) < seq_len
            h_new = jnp.where(valid, h_new, h_prev)
            c_new = jnp.where(valid, c_new, c_prev)
        return h_new, c_new

    h, c = jax.lax.fori_loop(0, time_chunk, step, (h_sc[...], c_sc[...]),
                             unroll=True)

    # Single scratch store per chunk (keeps the v5e vst slot quiet).
    h_sc[...] = h
    c_sc[...] = c

    @pl.when(chunk == pl.num_programs(0) - 1)
    def _():
        hn_ref[...] = h
        cn_ref[...] = c
        logits_ref[...] = (
            jnp.dot(h, wfc_ref[...], preferred_element_type=jnp.float32)
            + bfc_ref[...])


def lstm_sentiment_forward(x_ids, params):
    """Pallas implementation of BiLSTM_SentimentAnalysis.forward(x, init_hidden(B)).

    Returns (logits (B, 2), (h_n (1, B, H), c_n (1, B, H))).
    """
    emb_table = params["embedding"]             # (V, E)
    w_ih = params["w_ih"]                       # (4H, E)  PyTorch layout
    w_hh = params["w_hh"]                       # (4H, H)
    b_ih = params["b_ih"]                       # (4H,)
    b_hh = params["b_hh"]                       # (4H,)
    w_fc = params["w_fc"]                       # (2, H)
    b_fc = params["b_fc"]                       # (2,)

    B, T = x_ids.shape
    E = emb_table.shape[1]
    H = w_hh.shape[1]
    G = 4 * H

    # ---- static tiling decisions -------------------------------------------------------
    B_pad = _round_up(B, 8)                     # f32 sublane granularity
    Tc = T if T <= 32 else 32                   # timesteps per grid step (unrolled in-kernel)
    n_chunks = -(-T // Tc)
    T_pad = n_chunks * Tc
    R = T_pad * B_pad                           # flattened (t, b) rows for the projection
    Rtile = R if R <= 512 else 512
    R_pad = _round_up(R, Rtile)
    FC_PAD = 128                                # lane-dense logits store

    # ---- glue (plain JAX): embedding lookup, padding, weight transposes -----------------
    embs = jnp.take(emb_table, x_ids, axis=0)                         # (B, T, E)
    embs = jnp.pad(embs, ((0, B_pad - B), (0, T_pad - T), (0, 0)))    # (B_pad, T_pad, E)
    embs_tm = jnp.transpose(embs, (1, 0, 2))                          # (T_pad, B_pad, E)
    x_rows = embs_tm.reshape(R, E)
    if R_pad != R:
        x_rows = jnp.pad(x_rows, ((0, R_pad - R), (0, 0)))

    wih_t = jnp.transpose(w_ih)                                       # (E, 4H)
    whh_t = jnp.transpose(w_hh)                                       # (H, 4H)
    bias = (b_ih + b_hh).reshape(1, G)                                # (1, 4H)
    wfc_pad = jnp.zeros((H, FC_PAD), jnp.float32).at[:, :2].set(jnp.transpose(w_fc))
    bfc_pad = jnp.zeros((1, FC_PAD), jnp.float32).at[:, :2].set(b_fc.reshape(1, 2))

    # ---- phase 1: one big input-projection matmul over all (t, b) rows ------------------
    xproj_rows = pl.pallas_call(
        _input_proj_kernel,
        out_shape=jax.ShapeDtypeStruct((R_pad, G), jnp.float32),
        grid_spec=pltpu.PrefetchScalarGridSpec(
            num_scalar_prefetch=0,
            grid=(R_pad // Rtile,),
            in_specs=[
                pl.BlockSpec((Rtile, E), lambda r: (r, 0)),           # embedding rows
                pl.BlockSpec((E, G), lambda r: (0, 0)),               # W_ih^T (resident)
                pl.BlockSpec((1, G), lambda r: (0, 0)),               # bias
            ],
            out_specs=pl.BlockSpec((Rtile, G), lambda r: (r, 0)),
        ),
        compiler_params=pltpu.CompilerParams(
            dimension_semantics=("parallel",)),
    )(x_rows, wih_t, bias)

    xproj = xproj_rows[:R].reshape(T_pad, B_pad, G)                   # (T_pad, B_pad, 4H)

    # ---- phase 2: sequential recurrence over time chunks + fc ---------------------------
    kernel = functools.partial(
        _lstm_recurrence_kernel,
        hidden_dim=H, time_chunk=Tc, seq_len=T, padded_len=T_pad)

    logits_pad, hn_pad, cn_pad = pl.pallas_call(
        kernel,
        out_shape=(
            jax.ShapeDtypeStruct((B_pad, FC_PAD), jnp.float32),
            jax.ShapeDtypeStruct((B_pad, H), jnp.float32),
            jax.ShapeDtypeStruct((B_pad, H), jnp.float32),
        ),
        grid_spec=pltpu.PrefetchScalarGridSpec(
            num_scalar_prefetch=0,
            grid=(n_chunks,),
            in_specs=[
                pl.BlockSpec((Tc, B_pad, G), lambda c: (c, 0, 0)),    # xproj chunk
                pl.BlockSpec((H, G), lambda c: (0, 0)),               # W_hh^T (resident)
                pl.BlockSpec((H, FC_PAD), lambda c: (0, 0)),          # W_fc^T (padded)
                pl.BlockSpec((1, FC_PAD), lambda c: (0, 0)),          # b_fc (padded)
            ],
            out_specs=[
                pl.BlockSpec((B_pad, FC_PAD), lambda c: (0, 0)),      # logits (padded lanes)
                pl.BlockSpec((B_pad, H), lambda c: (0, 0)),           # h_n
                pl.BlockSpec((B_pad, H), lambda c: (0, 0)),           # c_n
            ],
            scratch_shapes=[
                pltpu.VMEM((B_pad, H), jnp.float32),                  # h carry
                pltpu.VMEM((B_pad, H), jnp.float32),                  # c carry
            ],
        ),
        compiler_params=pltpu.CompilerParams(
            dimension_semantics=("arbitrary",)),                      # sequential recurrence
    )(xproj, whh_t, wfc_pad, bfc_pad)

    logits = logits_pad[:B, :2]
    h_n = hn_pad[:B][None, ...]
    c_n = cn_pad[:B][None, ...]
    return logits, (h_n, c_n)


def _reference_forward(x_ids, params):
    """Pure-JAX reference (mirrors torch.nn.LSTM + Linear, eval-mode dropout)."""
    emb = jnp.take(params["embedding"], x_ids, axis=0)     # (B, T, E)
    B, T, _ = emb.shape
    H = params["w_hh"].shape[1]
    wih_t = params["w_ih"].T
    whh_t = params["w_hh"].T
    bias = params["b_ih"] + params["b_hh"]

    def step(carry, x_t):
        h, c = carry
        gates = x_t @ wih_t + h @ whh_t + bias
        i = jax.nn.sigmoid(gates[:, 0 * H:1 * H])
        f = jax.nn.sigmoid(gates[:, 1 * H:2 * H])
        g = jnp.tanh(gates[:, 2 * H:3 * H])
        o = jax.nn.sigmoid(gates[:, 3 * H:4 * H])
        c = f * c + i * g
        h = o * jnp.tanh(c)
        return (h, c), h

    h0 = jnp.zeros((B, H), jnp.float32)
    c0 = jnp.zeros((B, H), jnp.float32)
    (h_n, c_n), _ = jax.lax.scan(step, (h0, c0), jnp.transpose(emb, (1, 0, 2)))
    logits = h_n @ params["w_fc"].T + params["b_fc"]
    return logits, (h_n[None, ...], c_n[None, ...])


def _init_params(key, vocab_size, embedding_dim, hidden_dim):
    """Deterministic init matching the PyTorch module's parameter shapes."""
    ks = jax.random.split(key, 7)
    H, E, V = hidden_dim, embedding_dim, vocab_size
    bound = 1.0 / jnp.sqrt(jnp.float32(H))
    emb = jax.random.normal(ks[0], (V, E), jnp.float32)
    emb = emb.at[0].set(0.0)                                # padding_idx=0
    u = lambda k, shape: jax.random.uniform(k, shape, jnp.float32, -bound, bound)
    return {
        "embedding": emb,
        "w_ih": u(ks[1], (4 * H, E)),
        "w_hh": u(ks[2], (4 * H, H)),
        "b_ih": u(ks[3], (4 * H,)),
        "b_hh": u(ks[4], (4 * H,)),
        "w_fc": u(ks[5], (2, H)),
        "b_fc": u(ks[6], (2,)),
    }


if __name__ == "__main__":
    vocab_size, embedding_dim, hidden_dim = 50, 16, 32
    batch, seq_len = 2, 8

    key = jax.random.PRNGKey(0)
    pkey, xkey = jax.random.split(key)
    params = _init_params(pkey, vocab_size, embedding_dim, hidden_dim)
    x_ids = jax.random.randint(xkey, (batch, seq_len), 0, vocab_size, jnp.int32)

    logits, (h_n, c_n) = jax.jit(lstm_sentiment_forward)(x_ids, params)
    jax.block_until_ready((logits, h_n, c_n))

    ref_logits, (ref_h, ref_c) = _reference_forward(x_ids, params)
    assert logits.shape == (batch, 2)
    assert h_n.shape == (1, batch, hidden_dim) and c_n.shape == (1, batch, hidden_dim)
    assert jnp.allclose(logits, ref_logits, atol=1e-5), "logits mismatch"
    assert jnp.allclose(h_n, ref_h, atol=1e-5), "h_n mismatch"
    assert jnp.allclose(c_n, ref_c, atol=1e-5), "c_n mismatch"

    print("KERNEL_OK")
</pallas_src>

<mosaic_0001>
module attributes {stable_mosaic.version = 11 : i64} {
  func.func @_input_proj_kernel(%arg0: i32, %arg1: memref<64x16xf32, #tpu.memory_space<vmem>>, %arg2: memref<16x128xf32, #tpu.memory_space<vmem>>, %arg3: memref<1x128xf32, #tpu.memory_space<vmem>>, %arg4: memref<64x128xf32, #tpu.memory_space<vmem>>) attributes {dimension_semantics = [#tpu.dimension_semantics<parallel>], iteration_bounds = array<i64: 1>, scalar_prefetch = 0 : i64, scratch_operands = 0 : i64, tpu.core_type = #tpu.core_type<tc>, window_params = [{transform_indices = @transform_0, window_bounds = array<i64: 64, 16>}, {pipeline_mode = #tpu.pipeline_mode<synchronous>, transform_indices = @transform_1, window_bounds = array<i64: 16, 128>}, {pipeline_mode = #tpu.pipeline_mode<synchronous>, transform_indices = @transform_2, window_bounds = array<i64: 1, 128>}, {transform_indices = @transform_3, window_bounds = array<i64: 64, 128>}]} {
    %c0 = arith.constant 0 : index
    %c0_0 = arith.constant 0 : index
    %0 = vector.load %arg1[%c0, %c0_0] : memref<64x16xf32, #tpu.memory_space<vmem>>, vector<64x16xf32>
    %c0_1 = arith.constant 0 : index
    %c0_2 = arith.constant 0 : index
    %1 = vector.load %arg2[%c0_1, %c0_2] : memref<16x128xf32, #tpu.memory_space<vmem>>, vector<16x128xf32>
    %cst = arith.constant dense<0.000000e+00> : vector<64x128xf32>
    %2 = tpu.matmul %0, %1, %cst {dimension_numbers = #tpu.dot_dimension_numbers<[1], [0], [0], [1], [0, 0, 1, 1], [], []>} : vector<64x16xf32>, vector<16x128xf32>, vector<64x128xf32> -> vector<64x128xf32>
    %c0_3 = arith.constant 0 : index
    %c0_4 = arith.constant 0 : index
    %3 = vector.load %arg3[%c0_3, %c0_4] : memref<1x128xf32, #tpu.memory_space<vmem>>, vector<1x128xf32>
    %4 = vector.broadcast %3 : vector<1x128xf32> to vector<64x128xf32>
    %5 = arith.addf %2, %4 : vector<64x128xf32>
    %c0_5 = arith.constant 0 : index
    %c0_6 = arith.constant 0 : index
    %6 = vector.load %arg4[%c0_5, %c0_6] : memref<64x128xf32, #tpu.memory_space<vmem>>, vector<64x128xf32>
    tpu.vector_store %arg4[%c0_5, %c0_6], %5 {strides = array<i32>} : memref<64x128xf32, #tpu.memory_space<vmem>>, vector<64x128xf32>,
    return
  }
  func.func @transform_0(%arg0: i32) -> (i32, i32) {
    %c0_i32 = arith.constant 0 : i32
    %c0_i32_0 = arith.constant 0 : i32
    return %arg0, %c0_i32 : i32, i32
  }
  func.func @transform_1(%arg0: i32) -> (i32, i32) {
    %c0_i32 = arith.constant 0 : i32
    %c0_i32_0 = arith.constant 0 : i32
    %c0_i32_1 = arith.constant 0 : i32
    return %c0_i32, %c0_i32_0 : i32, i32
  }
  func.func @transform_2(%arg0: i32) -> (i32, i32) {
    %c0_i32 = arith.constant 0 : i32
    %c0_i32_0 = arith.constant 0 : i32
    %c0_i32_1 = arith.constant 0 : i32
    return %c0_i32, %c0_i32_0 : i32, i32
  }
  func.func @transform_3(%arg0: i32) -> (i32, i32) {
    %c0_i32 = arith.constant 0 : i32
    %c0_i32_0 = arith.constant 0 : i32
    return %arg0, %c0_i32 : i32, i32
  }
}

module attributes {stable_mosaic.version = 11 : i64} {
  func.func @_lstm_recurrence_kernel(%arg0: i32, %arg1: memref<8x8x128xf32, #tpu.memory_space<vmem>>, %arg2: memref<32x128xf32, #tpu.memory_space<vmem>>, %arg3: memref<32x128xf32, #tpu.memory_space<vmem>>, %arg4: memref<1x128xf32, #tpu.memory_space<vmem>>, %arg5: memref<8x128xf32, #tpu.memory_space<vmem>>, %arg6: memref<8x32xf32, #tpu.memory_space<vmem>>, %arg7: memref<8x32xf32, #tpu.memory_space<vmem>>, %arg8: memref<8x32xf32, #tpu.memory_space<vmem>>, %arg9: memref<8x32xf32, #tpu.memory_space<vmem>>) attributes {dimension_semantics = [#tpu.dimension_semantics<arbitrary>], iteration_bounds = array<i64: 1>, scalar_prefetch = 0 : i64, scratch_operands = 2 : i64, tpu.core_type = #tpu.core_type<tc>, window_params = [{transform_indices = @transform_0, window_bounds = array<i64: 8, 8, 128>}, {pipeline_mode = #tpu.pipeline_mode<synchronous>, transform_indices = @transform_1, window_bounds = array<i64: 32, 128>}, {pipeline_mode = #tpu.pipeline_mode<synchronous>, transform_indices = @transform_2, window_bounds = array<i64: 32, 128>}, {pipeline_mode = #tpu.pipeline_mode<synchronous>, transform_indices = @transform_3, window_bounds = array<i64: 1, 128>}, {pipeline_mode = #tpu.pipeline_mode<synchronous>, transform_indices = @transform_4, window_bounds = array<i64: 8, 128>}, {pipeline_mode = #tpu.pipeline_mode<synchronous>, transform_indices = @transform_5, window_bounds = array<i64: 8, 32>}, {pipeline_mode = #tpu.pipeline_mode<synchronous>, transform_indices = @transform_6, window_bounds = array<i64: 8, 32>}]} {
    %c0_i32 = arith.constant 0 : i32
    %0 = arith.cmpi eq, %arg0, %c0_i32 : i32
    %1 = arith.extui %0 : i1 to i32
    %c0_i32_0 = arith.constant 0 : i32
    %2 = arith.cmpi ne, %1, %c0_i32_0 : i32
    scf.if %2 {
      %cst_60 = arith.constant 0.000000e+00 : f32
      %251 = vector.broadcast %cst_60 : f32 to vector<8x32xf32>
      %c0_61 = arith.constant 0 : index
      %c0_62 = arith.constant 0 : index
      %252 = vector.load %arg8[%c0_61, %c0_62] : memref<8x32xf32, #tpu.memory_space<vmem>>, vector<8x32xf32>
      tpu.vector_store %arg8[%c0_61, %c0_62], %251 {strides = array<i32>} : memref<8x32xf32, #tpu.memory_space<vmem>>, vector<8x32xf32>,
      %cst_63 = arith.constant 0.000000e+00 : f32
      %253 = vector.broadcast %cst_63 : f32 to vector<8x32xf32>
      %c0_64 = arith.constant 0 : index
      %c0_65 = arith.constant 0 : index
      %254 = vector.load %arg9[%c0_64, %c0_65] : memref<8x32xf32, #tpu.memory_space<vmem>>, vector<8x32xf32>
      tpu.vector_store %arg9[%c0_64, %c0_65], %253 {strides = array<i32>} : memref<8x32xf32, #tpu.memory_space<vmem>>, vector<8x32xf32>,
    } else {
    }
    %c0 = arith.constant 0 : index
    %c0_1 = arith.constant 0 : index
    %3 = vector.load %arg2[%c0, %c0_1] : memref<32x128xf32, #tpu.memory_space<vmem>>, vector<32x128xf32>
    %c0_2 = arith.constant 0 : index
    %c0_3 = arith.constant 0 : index
    %4 = vector.load %arg8[%c0_2, %c0_3] : memref<8x32xf32, #tpu.memory_space<vmem>>, vector<8x32xf32>
    %c0_4 = arith.constant 0 : index
    %c0_5 = arith.constant 0 : index
    %5 = vector.load %arg9[%c0_4, %c0_5] : memref<8x32xf32, #tpu.memory_space<vmem>>, vector<8x32xf32>
    %c0_i32_6 = arith.constant 0 : i32
    %6 = arith.index_cast %c0_i32_6 : i32 to index
    %c0_7 = arith.constant 0 : index
    %c0_8 = arith.constant 0 : index
    %7 = vector.load %arg1[%6, %c0_7, %c0_8] : memref<8x8x128xf32, #tpu.memory_space<vmem>>, vector<1x8x128xf32>
    %8 = vector.shape_cast %7 : vector<1x8x128xf32> to vector<8x128xf32>
    %cst = arith.constant dense<0.000000e+00> : vector<8x128xf32>
    %9 = tpu.matmul %4, %3, %cst {dimension_numbers = #tpu.dot_dimension_numbers<[1], [0], [0], [1], [0, 0, 1, 1], [], []>} : vector<8x32xf32>, vector<32x128xf32>, vector<8x128xf32> -> vector<8x128xf32>
    %10 = arith.addf %8, %9 : vector<8x128xf32>
    %11 = vector.extract_strided_slice %10 {offsets = [0, 0], sizes = [8, 32], strides = [1, 1]} : vector<8x128xf32> to vector<8x32xf32>
    %12 = arith.negf %11 : vector<8x32xf32>
    %13 = math.exp %12 : vector<8x32xf32>
    %cst_9 = arith.constant 1.000000e+00 : f32
    %14 = vector.broadcast %cst_9 : f32 to vector<8x32xf32>
    %15 = arith.addf %14, %13 : vector<8x32xf32>
    %16 = arith.divf %14, %15 : vector<8x32xf32>
    %17 = vector.extract_strided_slice %10 {offsets = [0, 32], sizes = [8, 32], strides = [1, 1]} : vector<8x128xf32> to vector<8x32xf32>
    %18 = arith.negf %17 : vector<8x32xf32>
    %19 = math.exp %18 : vector<8x32xf32>
    %cst_10 = arith.constant 1.000000e+00 : f32
    %20 = vector.broadcast %cst_10 : f32 to vector<8x32xf32>
    %21 = arith.addf %20, %19 : vector<8x32xf32>
    %22 = arith.divf %20, %21 : vector<8x32xf32>
    %23 = vector.extract_strided_slice %10 {offsets = [0, 64], sizes = [8, 32], strides = [1, 1]} : vector<8x128xf32> to vector<8x32xf32>
    %24 = math.tanh %23 : vector<8x32xf32>
    %25 = vector.extract_strided_slice %10 {offsets = [0, 96], sizes = [8, 32], strides = [1, 1]} : vector<8x128xf32> to vector<8x32xf32>
    %26 = arith.negf %25 : vector<8x32xf32>
    %27 = math.exp %26 : vector<8x32xf32>
    %cst_11 = arith.constant 1.000000e+00 : f32
    %28 = vector.broadcast %cst_11 : f32 to vector<8x32xf32>
    %29 = arith.addf %28, %27 : vector<8x32xf32>
    %30 = arith.divf %28, %29 : vector<8x32xf32>
    %31 = arith.mulf %22, %5 : vector<8x32xf32>
    %32 = arith.mulf %16, %24 : vector<8x32xf32>
    %33 = arith.addf %31, %32 : vector<8x32xf32>
    %34 = math.tanh %33 : vector<8x32xf32>
    %35 = arith.mulf %30, %34 : vector<8x32xf32>
    %c1_i32 = arith.constant 1 : i32
    %36 = arith.index_cast %c1_i32 : i32 to index
    %c0_12 = arith.constant 0 : index
    %c0_13 = arith.constant 0 : index
    %37 = vector.load %arg1[%36, %c0_12, %c0_13] : memref<8x8x128xf32, #tpu.memory_space<vmem>>, vector<1x8x128xf32>
    %38 = vector.shape_cast %37 : vector<1x8x128xf32> to vector<8x128xf32>
    %cst_14 = arith.constant dense<0.000000e+00> : vector<8x128xf32>
    %39 = tpu.matmul %35, %3, %cst_14 {dimension_numbers = #tpu.dot_dimension_numbers<[1], [0], [0], [1], [0, 0, 1, 1], [], []>} : vector<8x32xf32>, vector<32x128xf32>, vector<8x128xf32> -> vector<8x128xf32>
    %40 = arith.addf %38, %39 : vector<8x128xf32>
    %41 = vector.extract_strided_slice %40 {offsets = [0, 0], sizes = [8, 32], strides = [1, 1]} : vector<8x128xf32> to vector<8x32xf32>
    %42 = arith.negf %41 : vector<8x32xf32>
    %43 = math.exp %42 : vector<8x32xf32>
    %cst_15 = arith.constant 1.000000e+00 : f32
    %44 = vector.broadcast %cst_15 : f32 to vector<8x32xf32>
    %45 = arith.addf %44, %43 : vector<8x32xf32>
    %46 = arith.divf %44, %45 : vector<8x32xf32>
    %47 = vector.extract_strided_slice %40 {offsets = [0, 32], sizes = [8, 32], strides = [1, 1]} : vector<8x128xf32> to vector<8x32xf32>
    %48 = arith.negf %47 : vector<8x32xf32>
    %49 = math.exp %48 : vector<8x32xf32>
    %cst_16 = arith.constant 1.000000e+00 : f32
    %50 = vector.broadcast %cst_16 : f32 to vector<8x32xf32>
    %51 = arith.addf %50, %49 : vector<8x32xf32>
    %52 = arith.divf %50, %51 : vector<8x32xf32>
    %53 = vector.extract_strided_slice %40 {offsets = [0, 64], sizes = [8, 32], strides = [1, 1]} : vector<8x128xf32> to vector<8x32xf32>
    %54 = math.tanh %53 : vector<8x32xf32>
    %55 = vector.extract_strided_slice %40 {offsets = [0, 96], sizes = [8, 32], strides = [1, 1]} : vector<8x128xf32> to vector<8x32xf32>
    %56 = arith.negf %55 : vector<8x32xf32>
    %57 = math.exp %56 : vector<8x32xf32>
    %cst_17 = arith.constant 1.000000e+00 : f32
    %58 = vector.broadcast %cst_17 : f32 to vector<8x32xf32>
    %59 = arith.addf %58, %57 : vector<8x32xf32>
    %60 = arith.divf %58, %59 : vector<8x32xf32>
    %61 = arith.mulf %52, %33 : vector<8x32xf32>
    %62 = arith.mulf %46, %54 : vector<8x32xf32>
    %63 = arith.addf %61, %62 : vector<8x32xf32>
    %64 = math.tanh %63 : vector<8x32xf32>
    %65 = arith.mulf %60, %64 : vector<8x32xf32>
    %c2_i32 = arith.constant 2 : i32
    %66 = arith.index_cast %c2_i32 : i32 to index
    %c0_18 = arith.constant 0 : index
    %c0_19 = arith.constant 0 : index
    %67 = vector.load %arg1[%66, %c0_18, %c0_19] : memref<8x8x128xf32, #tpu.memory_space<vmem>>, vector<1x8x128xf32>
    %68 = vector.shape_cast %67 : vector<1x8x128xf32> to vector<8x128xf32>
    %cst_20 = arith.constant dense<0.000000e+00> : vector<8x128xf32>
    %69 = tpu.matmul %65, %3, %cst_20 {dimension_numbers = #tpu.dot_dimension_numbers<[1], [0], [0], [1], [0, 0, 1, 1], [], []>} : vector<8x32xf32>, vector<32x128xf32>, vector<8x128xf32> -> vector<8x128xf32>
    %70 = arith.addf %68, %69 : vector<8x128xf32>
    %71 = vector.extract_strided_slice %70 {offsets = [0, 0], sizes = [8, 32], strides = [1, 1]} : vector<8x128xf32> to vector<8x32xf32>
    %72 = arith.negf %71 : vector<8x32xf32>
    %73 = math.exp %72 : vector<8x32xf32>
    %cst_21 = arith.constant 1.000000e+00 : f32
    %74 = vector.broadcast %cst_21 : f32 to vector<8x32xf32>
    %75 = arith.addf %74, %73 : vector<8x32xf32>
    %76 = arith.divf %74, %75 : vector<8x32xf32>
    %77 = vector.extract_strided_slice %70 {offsets = [0, 32], sizes = [8, 32], strides = [1, 1]} : vector<8x128xf32> to vector<8x32xf32>
    %78 = arith.negf %77 : vector<8x32xf32>
    %79 = math.exp %78 : vector<8x32xf32>
    %cst_22 = arith.constant 1.000000e+00 : f32
    %80 = vector.broadcast %cst_22 : f32 to vector<8x32xf32>
    %81 = arith.addf %80, %79 : vector<8x32xf32>
    %82 = arith.divf %80, %81 : vector<8x32xf32>
    %83 = vector.extract_strided_slice %70 {offsets = [0, 64], sizes = [8, 32], strides = [1, 1]} : vector<8x128xf32> to vector<8x32xf32>
    %84 = math.tanh %83 : vector<8x32xf32>
    %85 = vector.extract_strided_slice %70 {offsets = [0, 96], sizes = [8, 32], strides = [1, 1]} : vector<8x128xf32> to vector<8x32xf32>
    %86 = arith.negf %85 : vector<8x32xf32>
    %87 = math.exp %86 : vector<8x32xf32>
    %cst_23 = arith.constant 1.000000e+00 : f32
    %88 = vector.broadcast %cst_23 : f32 to vector<8x32xf32>
    %89 = arith.addf %88, %87 : vector<8x32xf32>
    %90 = arith.divf %88, %89 : vector<8x32xf32>
    %91 = arith.mulf %82, %63 : vector<8x32xf32>
    %92 = arith.mulf %76, %84 : vector<8x32xf32>
    %93 = arith.addf %91, %92 : vector<8x32xf32>
    %94 = math.tanh %93 : vector<8x32xf32>
    %95 = arith.mulf %90, %94 : vector<8x32xf32>
    %c3_i32 = arith.constant 3 : i32
    %96 = arith.index_cast %c3_i32 : i32 to index
    %c0_24 = arith.constant 0 : index
    %c0_25 = arith.constant 0 : index
    %97 = vector.load %arg1[%96, %c0_24, %c0_25] : memref<8x8x128xf32, #tpu.memory_space<vmem>>, vector<1x8x128xf32>
    %98 = vector.shape_cast %97 : vector<1x8x128xf32> to vector<8x128xf32>
    %cst_26 = arith.constant dense<0.000000e+00> : vector<8x128xf32>
    %99 = tpu.matmul %95, %3, %cst_26 {dimension_numbers = #tpu.dot_dimension_numbers<[1], [0], [0], [1], [0, 0, 1, 1], [], []>} : vector<8x32xf32>, vector<32x128xf32>, vector<8x128xf32> -> vector<8x128xf32>
    %100 = arith.addf %98, %99 : vector<8x128xf32>
    %101 = vector.extract_strided_slice %100 {offsets = [0, 0], sizes = [8, 32], strides = [1, 1]} : vector<8x128xf32> to vector<8x32xf32>
    %102 = arith.negf %101 : vector<8x32xf32>
    %103 = math.exp %102 : vector<8x32xf32>
    %cst_27 = arith.constant 1.000000e+00 : f32
    %104 = vector.broadcast %cst_27 : f32 to vector<8x32xf32>
    %105 = arith.addf %104, %103 : vector<8x32xf32>
    %106 = arith.divf %104, %105 : vector<8x32xf32>
    %107 = vector.extract_strided_slice %100 {offsets = [0, 32], sizes = [8, 32], strides = [1, 1]} : vector<8x128xf32> to vector<8x32xf32>
    %108 = arith.negf %107 : vector<8x32xf32>
    %109 = math.exp %108 : vector<8x32xf32>
    %cst_28 = arith.constant 1.000000e+00 : f32
    %110 = vector.broadcast %cst_28 : f32 to vector<8x32xf32>
    %111 = arith.addf %110, %109 : vector<8x32xf32>
    %112 = arith.divf %110, %111 : vector<8x32xf32>
    %113 = vector.extract_strided_slice %100 {offsets = [0, 64], sizes = [8, 32], strides = [1, 1]} : vector<8x128xf32> to vector<8x32xf32>
    %114 = math.tanh %113 : vector<8x32xf32>
    %115 = vector.extract_strided_slice %100 {offsets = [0, 96], sizes = [8, 32], strides = [1, 1]} : vector<8x128xf32> to vector<8x32xf32>
    %116 = arith.negf %115 : vector<8x32xf32>
    %117 = math.exp %116 : vector<8x32xf32>
    %cst_29 = arith.constant 1.000000e+00 : f32
    %118 = vector.broadcast %cst_29 : f32 to vector<8x32xf32>
    %119 = arith.addf %118, %117 : vector<8x32xf32>
    %120 = arith.divf %118, %119 : vector<8x32xf32>
    %121 = arith.mulf %112, %93 : vector<8x32xf32>
    %122 = arith.mulf %106, %114 : vector<8x32xf32>
    %123 = arith.addf %121, %122 : vector<8x32xf32>
    %124 = math.tanh %123 : vector<8x32xf32>
    %125 = arith.mulf %120, %124 : vector<8x32xf32>
    %c4_i32 = arith.constant 4 : i32
    %126 = arith.index_cast %c4_i32 : i32 to index
    %c0_30 = arith.constant 0 : index
    %c0_31 = arith.constant 0 : index
    %127 = vector.load %arg1[%126, %c0_30, %c0_31] : memref<8x8x128xf32, #tpu.memory_space<vmem>>, vector<1x8x128xf32>
    %128 = vector.shape_cast %127 : vector<1x8x128xf32> to vector<8x128xf32>
    %cst_32 = arith.constant dense<0.000000e+00> : vector<8x128xf32>
    %129 = tpu.matmul %125, %3, %cst_32 {dimension_numbers = #tpu.dot_dimension_numbers<[1], [0], [0], [1], [0, 0, 1, 1], [], []>} : vector<8x32xf32>, vector<32x128xf32>, vector<8x128xf32> -> vector<8x128xf32>
    %130 = arith.addf %128, %129 : vector<8x128xf32>
    %131 = vector.extract_strided_slice %130 {offsets = [0, 0], sizes = [8, 32], strides = [1, 1]} : vector<8x128xf32> to vector<8x32xf32>
    %132 = arith.negf %131 : vector<8x32xf32>
    %133 = math.exp %132 : vector<8x32xf32>
    %cst_33 = arith.constant 1.000000e+00 : f32
    %134 = vector.broadcast %cst_33 : f32 to vector<8x32xf32>
    %135 = arith.addf %134, %133 : vector<8x32xf32>
    %136 = arith.divf %134, %135 : vector<8x32xf32>
    %137 = vector.extract_strided_slice %130 {offsets = [0, 32], sizes = [8, 32], strides = [1, 1]} : vector<8x128xf32> to vector<8x32xf32>
    %138 = arith.negf %137 : vector<8x32xf32>
    %139 = math.exp %138 : vector<8x32xf32>
    %cst_34 = arith.constant 1.000000e+00 : f32
    %140 = vector.broadcast %cst_34 : f32 to vector<8x32xf32>
    %141 = arith.addf %140, %139 : vector<8x32xf32>
    %142 = arith.divf %140, %141 : vector<8x32xf32>
    %143 = vector.extract_strided_slice %130 {offsets = [0, 64], sizes = [8, 32], strides = [1, 1]} : vector<8x128xf32> to vector<8x32xf32>
    %144 = math.tanh %143 : vector<8x32xf32>
    %145 = vector.extract_strided_slice %130 {offsets = [0, 96], sizes = [8, 32], strides = [1, 1]} : vector<8x128xf32> to vector<8x32xf32>
    %146 = arith.negf %145 : vector<8x32xf32>
    %147 = math.exp %146 : vector<8x32xf32>
    %cst_35 = arith.constant 1.000000e+00 : f32
    %148 = vector.broadcast %cst_35 : f32 to vector<8x32xf32>
    %149 = arith.addf %148, %147 : vector<8x32xf32>
    %150 = arith.divf %148, %149 : vector<8x32xf32>
    %151 = arith.mulf %142, %123 : vector<8x32xf32>
    %152 = arith.mulf %136, %144 : vector<8x32xf32>
    %153 = arith.addf %151, %152 : vector<8x32xf32>
    %154 = math.tanh %153 : vector<8x32xf32>
    %155 = arith.mulf %150, %154 : vector<8x32xf32>
    %c5_i32 = arith.constant 5 : i32
    %156 = arith.index_cast %c5_i32 : i32 to index
    %c0_36 = arith.constant 0 : index
    %c0_37 = arith.constant 0 : index
    %157 = vector.load %arg1[%156, %c0_36, %c0_37] : memref<8x8x128xf32, #tpu.memory_space<vmem>>, vector<1x8x128xf32>
    %158 = vector.shape_cast %157 : vector<1x8x128xf32> to vector<8x128xf32>
    %cst_38 = arith.constant dense<0.000000e+00> : vector<8x128xf32>
    %159 = tpu.matmul %155, %3, %cst_38 {dimension_numbers = #tpu.dot_dimension_numbers<[1], [0], [0], [1], [0, 0, 1, 1], [], []>} : vector<8x32xf32>, vector<32x128xf32>, vector<8x128xf32> -> vector<8x128xf32>
    %160 = arith.addf %158, %159 : vector<8x128xf32>
    %161 = vector.extract_strided_slice %160 {offsets = [0, 0], sizes = [8, 32], strides = [1, 1]} : vector<8x128xf32> to vector<8x32xf32>
    %162 = arith.negf %161 : vector<8x32xf32>
    %163 = math.exp %162 : vector<8x32xf32>
    %cst_39 = arith.constant 1.000000e+00 : f32
    %164 = vector.broadcast %cst_39 : f32 to vector<8x32xf32>
    %165 = arith.addf %164, %163 : vector<8x32xf32>
    %166 = arith.divf %164, %165 : vector<8x32xf32>
    %167 = vector.extract_strided_slice %160 {offsets = [0, 32], sizes = [8, 32], strides = [1, 1]} : vector<8x128xf32> to vector<8x32xf32>
    %168 = arith.negf %167 : vector<8x32xf32>
    %169 = math.exp %168 : vector<8x32xf32>
    %cst_40 = arith.constant 1.000000e+00 : f32
    %170 = vector.broadcast %cst_40 : f32 to vector<8x32xf32>
    %171 = arith.addf %170, %169 : vector<8x32xf32>
    %172 = arith.divf %170, %171 : vector<8x32xf32>
    %173 = vector.extract_strided_slice %160 {offsets = [0, 64], sizes = [8, 32], strides = [1, 1]} : vector<8x128xf32> to vector<8x32xf32>
    %174 = math.tanh %173 : vector<8x32xf32>
    %175 = vector.extract_strided_slice %160 {offsets = [0, 96], sizes = [8, 32], strides = [1, 1]} : vector<8x128xf32> to vector<8x32xf32>
    %176 = arith.negf %175 : vector<8x32xf32>
    %177 = math.exp %176 : vector<8x32xf32>
    %cst_41 = arith.constant 1.000000e+00 : f32
    %178 = vector.broadcast %cst_41 : f32 to vector<8x32xf32>
    %179 = arith.addf %178, %177 : vector<8x32xf32>
    %180 = arith.divf %178, %179 : vector<8x32xf32>
    %181 = arith.mulf %172, %153 : vector<8x32xf32>
    %182 = arith.mulf %166, %174 : vector<8x32xf32>
    %183 = arith.addf %181, %182 : vector<8x32xf32>
    %184 = math.tanh %183 : vector<8x32xf32>
    %185 = arith.mulf %180, %184 : vector<8x32xf32>
    %c6_i32 = arith.constant 6 : i32
    %186 = arith.index_cast %c6_i32 : i32 to index
    %c0_42 = arith.constant 0 : index
    %c0_43 = arith.constant 0 : index
    %187 = vector.load %arg1[%186, %c0_42, %c0_43] : memref<8x8x128xf32, #tpu.memory_space<vmem>>, vector<1x8x128xf32>
    %188 = vector.shape_cast %187 : vector<1x8x128xf32> to vector<8x128xf32>
    %cst_44 = arith.constant dense<0.000000e+00> : vector<8x128xf32>
    %189 = tpu.matmul %185, %3, %cst_44 {dimension_numbers = #tpu.dot_dimension_numbers<[1], [0], [0], [1], [0, 0, 1, 1], [], []>} : vector<8x32xf32>, vector<32x128xf32>, vector<8x128xf32> -> vector<8x128xf32>
    %190 = arith.addf %188, %189 : vector<8x128xf32>
    %191 = vector.extract_strided_slice %190 {offsets = [0, 0], sizes = [8, 32], strides = [1, 1]} : vector<8x128xf32> to vector<8x32xf32>
    %192 = arith.negf %191 : vector<8x32xf32>
    %193 = math.exp %192 : vector<8x32xf32>
    %cst_45 = arith.constant 1.000000e+00 : f32
    %194 = vector.broadcast %cst_45 : f32 to vector<8x32xf32>
    %195 = arith.addf %194, %193 : vector<8x32xf32>
    %196 = arith.divf %194, %195 : vector<8x32xf32>
    %197 = vector.extract_strided_slice %190 {offsets = [0, 32], sizes = [8, 32], strides = [1, 1]} : vector<8x128xf32> to vector<8x32xf32>
    %198 = arith.negf %197 : vector<8x32xf32>
    %199 = math.exp %198 : vector<8x32xf32>
    %cst_46 = arith.constant 1.000000e+00 : f32
    %200 = vector.broadcast %cst_46 : f32 to vector<8x32xf32>
    %201 = arith.addf %200, %199 : vector<8x32xf32>
    %202 = arith.divf %200, %201 : vector<8x32xf32>
    %203 = vector.extract_strided_slice %190 {offsets = [0, 64], sizes = [8, 32], strides = [1, 1]} : vector<8x128xf32> to vector<8x32xf32>
    %204 = math.tanh %203 : vector<8x32xf32>
    %205 = vector.extract_strided_slice %190 {offsets = [0, 96], sizes = [8, 32], strides = [1, 1]} : vector<8x128xf32> to vector<8x32xf32>
    %206 = arith.negf %205 : vector<8x32xf32>
    %207 = math.exp %206 : vector<8x32xf32>
    %cst_47 = arith.constant 1.000000e+00 : f32
    %208 = vector.broadcast %cst_47 : f32 to vector<8x32xf32>
    %209 = arith.addf %208, %207 : vector<8x32xf32>
    %210 = arith.divf %208, %209 : vector<8x32xf32>
    %211 = arith.mulf %202, %183 : vector<8x32xf32>
    %212 = arith.mulf %196, %204 : vector<8x32xf32>
    %213 = arith.addf %211, %212 : vector<8x32xf32>
    %214 = math.tanh %213 : vector<8x32xf32>
    %215 = arith.mulf %210, %214 : vector<8x32xf32>
    %c7_i32 = arith.constant 7 : i32
    %216 = arith.index_cast %c7_i32 : i32 to index
    %c0_48 = arith.constant 0 : index
    %c0_49 = arith.constant 0 : index
    %217 = vector.load %arg1[%216, %c0_48, %c0_49] : memref<8x8x128xf32, #tpu.memory_space<vmem>>, vector<1x8x128xf32>
    %218 = vector.shape_cast %217 : vector<1x8x128xf32> to vector<8x128xf32>
    %cst_50 = arith.constant dense<0.000000e+00> : vector<8x128xf32>
    %219 = tpu.matmul %215, %3, %cst_50 {dimension_numbers = #tpu.dot_dimension_numbers<[1], [0], [0], [1], [0, 0, 1, 1], [], []>} : vector<8x32xf32>, vector<32x128xf32>, vector<8x128xf32> -> vector<8x128xf32>
    %220 = arith.addf %218, %219 : vector<8x128xf32>
    %221 = vector.extract_strided_slice %220 {offsets = [0, 0], sizes = [8, 32], strides = [1, 1]} : vector<8x128xf32> to vector<8x32xf32>
    %222 = arith.negf %221 : vector<8x32xf32>
    %223 = math.exp %222 : vector<8x32xf32>
    %cst_51 = arith.constant 1.000000e+00 : f32
    %224 = vector.broadcast %cst_51 : f32 to vector<8x32xf32>
    %225 = arith.addf %224, %223 : vector<8x32xf32>
    %226 = arith.divf %224, %225 : vector<8x32xf32>
    %227 = vector.extract_strided_slice %220 {offsets = [0, 32], sizes = [8, 32], strides = [1, 1]} : vector<8x128xf32> to vector<8x32xf32>
    %228 = arith.negf %227 : vector<8x32xf32>
    %229 = math.exp %228 : vector<8x32xf32>
    %cst_52 = arith.constant 1.000000e+00 : f32
    %230 = vector.broadcast %cst_52 : f32 to vector<8x32xf32>
    %231 = arith.addf %230, %229 : vector<8x32xf32>
    %232 = arith.divf %230, %231 : vector<8x32xf32>
    %233 = vector.extract_strided_slice %220 {offsets = [0, 64], sizes = [8, 32], strides = [1, 1]} : vector<8x128xf32> to vector<8x32xf32>
    %234 = math.tanh %233 : vector<8x32xf32>
    %235 = vector.extract_strided_slice %220 {offsets = [0, 96], sizes = [8, 32], strides = [1, 1]} : vector<8x128xf32> to vector<8x32xf32>
    %236 = arith.negf %235 : vector<8x32xf32>
    %237 = math.exp %236 : vector<8x32xf32>
    %cst_53 = arith.constant 1.000000e+00 : f32
    %238 = vector.broadcast %cst_53 : f32 to vector<8x32xf32>
    %239 = arith.addf %238, %237 : vector<8x32xf32>
    %240 = arith.divf %238, %239 : vector<8x32xf32>
    %241 = arith.mulf %232, %213 : vector<8x32xf32>
    %242 = arith.mulf %226, %234 : vector<8x32xf32>
    %243 = arith.addf %241, %242 : vector<8x32xf32>
    %244 = math.tanh %243 : vector<8x32xf32>
    %245 = arith.mulf %240, %244 : vector<8x32xf32>
    %c8_i32 = arith.constant 8 : i32
    %c0_54 = arith.constant 0 : index
    %c0_55 = arith.constant 0 : index
    %246 = vector.load %arg8[%c0_54, %c0_55] : memref<8x32xf32, #tpu.memory_space<vmem>>, vector<8x32xf32>
    tpu.vector_store %arg8[%c0_54, %c0_55], %245 {strides = array<i32>} : memref<8x32xf32, #tpu.memory_space<vmem>>, vector<8x32xf32>,
    %c0_56 = arith.constant 0 : index
    %c0_57 = arith.constant 0 : index
    %247 = vector.load %arg9[%c0_56, %c0_57] : memref<8x32xf32, #tpu.memory_space<vmem>>, vector<8x32xf32>
    tpu.vector_store %arg9[%c0_56, %c0_57], %243 {strides = array<i32>} : memref<8x32xf32, #tpu.memory_space<vmem>>, vector<8x32xf32>,
    %c0_i32_58 = arith.constant 0 : i32
    %248 = arith.cmpi eq, %arg0, %c0_i32_58 : i32
    %249 = arith.extui %248 : i1 to i32
    %c0_i32_59 = arith.constant 0 : i32
    %250 = arith.cmpi ne, %249, %c0_i32_59 : i32
    scf.if %250 {
      %c0_60 = arith.constant 0 : index
      %c0_61 = arith.constant 0 : index
      %251 = vector.load %arg6[%c0_60, %c0_61] : memref<8x32xf32, #tpu.memory_space<vmem>>, vector<8x32xf32>
      tpu.vector_store %arg6[%c0_60, %c0_61], %245 {strides = array<i32>} : memref<8x32xf32, #tpu.memory_space<vmem>>, vector<8x32xf32>,
      %c0_62 = arith.constant 0 : index
      %c0_63 = arith.constant 0 : index
      %252 = vector.load %arg7[%c0_62, %c0_63] : memref<8x32xf32, #tpu.memory_space<vmem>>, vector<8x32xf32>
      tpu.vector_store %arg7[%c0_62, %c0_63], %243 {strides = array<i32>} : memref<8x32xf32, #tpu.memory_space<vmem>>, vector<8x32xf32>,
      %c0_64 = arith.constant 0 : index
      %c0_65 = arith.constant 0 : index
      %253 = vector.load %arg3[%c0_64, %c0_65] : memref<32x128xf32, #tpu.memory_space<vmem>>, vector<32x128xf32>
      %cst_66 = arith.constant dense<0.000000e+00> : vector<8x128xf32>
      %254 = tpu.matmul %245, %253, %cst_66 {dimension_numbers = #tpu.dot_dimension_numbers<[1], [0], [0], [1], [0, 0, 1, 1], [], []>} : vector<8x32xf32>, vector<32x128xf32>, vector<8x128xf32> -> vector<8x128xf32>
      %c0_67 = arith.constant 0 : index
      %c0_68 = arith.constant 0 : index
      %255 = vector.load %arg4[%c0_67, %c0_68] : memref<1x128xf32, #tpu.memory_space<vmem>>, vector<1x128xf32>
      %256 = vector.broadcast %255 : vector<1x128xf32> to vector<8x128xf32>
      %257 = arith.addf %254, %256 : vector<8x128xf32>
      %c0_69 = arith.constant 0 : index
      %c0_70 = arith.constant 0 : index
      %258 = vector.load %arg5[%c0_69, %c0_70] : memref<8x128xf32, #tpu.memory_space<vmem>>, vector<8x128xf32>
      tpu.vector_store %arg5[%c0_69, %c0_70], %257 {strides = array<i32>} : memref<8x128xf32, #tpu.memory_space<vmem>>, vector<8x128xf32>,
    } else {
    }
    return
  }
  func.func @transform_0(%arg0: i32) -> (i32, i32, i32) {
    %c0_i32 = arith.constant 0 : i32
    %c0_i32_0 = arith.constant 0 : i32
    %c0_i32_1 = arith.constant 0 : i32
    return %arg0, %c0_i32, %c0_i32_0 : i32, i32, i32
  }
  func.func @transform_1(%arg0: i32) -> (i32, i32) {
    %c0_i32 = arith.constant 0 : i32
    %c0_i32_0 = arith.constant 0 : i32
    %c0_i32_1 = arith.constant 0 : i32
    return %c0_i32, %c0_i32_0 : i32, i32
  }
  func.func @transform_2(%arg0: i32) -> (i32, i32) {
    %c0_i32 = arith.constant 0 : i32
    %c0_i32_0 = arith.constant 0 : i32
    %c0_i32_1 = arith.constant 0 : i32
    return %c0_i32, %c0_i32_0 : i32, i32
  }
  func.func @transform_3(%arg0: i32) -> (i32, i32) {
    %c0_i32 = arith.constant 0 : i32
    %c0_i32_0 = arith.constant 0 : i32
    %c0_i32_1 = arith.constant 0 : i32
    return %c0_i32, %c0_i32_0 : i32, i32
  }
  func.func @transform_4(%arg0: i32) -> (i32, i32) {
    %c0_i32 = arith.constant 0 : i32
    %c0_i32_0 = arith.constant 0 : i32
    %c0_i32_1 = arith.constant 0 : i32
    return %c0_i32, %c0_i32_0 : i32, i32
  }
  func.func @transform_5(%arg0: i32) -> (i32, i32) {
    %c0_i32 = arith.constant 0 : i32
    %c0_i32_0 = arith.constant 0 : i32
    %c0_i32_1 = arith.constant 0 : i32
    return %c0_i32, %c0_i32_0 : i32, i32
  }
  func.func @transform_6(%arg0: i32) -> (i32, i32) {
    %c0_i32 = arith.constant 0 : i32
    %c0_i32_0 = arith.constant 0 : i32
    %c0_i32_1 = arith.constant 0 : i32
    return %c0_i32, %c0_i32_0 : i32, i32
  }
}

</mosaic_0001>

<bundles_post_ra>
// kernel: lstm_sentiment_forward.2
= control target key start
LH: loop header
LB: loop body
LE: loop exit
PB: predicated region body
PF: predicated region fallthrough
CT: control target
= control target key end

     0   :  { %vm31_vm0 = vcmask 130048   ;;  %s299_s1 = inlined_call_operand.vmem [shape: f32[16,128], index: 1, kind: input, shape index: {}]   ;;  %s300_s0 = inlined_call_operand.vmem [shape: f32[64,16], index: 0, kind: input, shape index: {}]   ;;  %s301_s2 = inlined_call_operand.vmem [shape: f32[1,128], index: 2, kind: input, shape index: {}]   ;;  %s302_s3 = inlined_call_operand.vmem [shape: f32[64,128], index: 3, kind: output, shape index: {}]  }
   0x1   :  { %v22_v0 = vld [vmem:[%s299_s1] sm:$0xff]  ;;  %v23_v1 = vld [vmem:[%s299_s1 + $0x8] sm:$0xff]  ;;  %v16_v7 = vld [vmem:[%s300_s0 + $0x10] sm:$0xff] }
   0x2   :  { %v14_v2 = vld [vmem:[%s300_s0] sm:$0xff]  ;;  %v208_v3 = vpack.c.bf16 %v23_v1, %v22_v0  ;;  %v15_v5 = vld [vmem:[%s300_s0 + $0x8] sm:$0xff]  ;;  %v20_v8 = vld [vmem:[%s300_s0 + $0x30] sm:$0xff] }
   0x3   :  { %196 = vmatprep.mubr.msk.f32.mxu0 %vm31_vm0, %v14_v2  ;;  %v18_v4 = vld [vmem:[%s300_s0 + $0x20] sm:$0xff]  ;;  %v19_v6 = vld [vmem:[%s300_s0 + $0x28] sm:$0xff]  ;;  %v17_v9 = vld [vmem:[%s300_s0 + $0x18] sm:$0xff] }
   0x4   :  { %202 = vmatprep.mubr.msk.f32.mxu1 %vm31_vm0, %v18_v4  ;;  %209 = vmatprep.subr.bf16.mxu0 %v208_v3  ;;  %v21_v10 = vld [vmem:[%s300_s0 + $0x38] sm:$0xff]  ;;  %v173_v11 = vld [vmem:[%s301_s2] ss:$0 sm:$0xff] }
   0x5   :  { %212 = vmatprep.subr.bf16.mxu1 %v208_v3  ;;  %211 = vmatpush3.bf16.msra.mxu0 %v208_v3 }
   0x6   :  { %213 = vmatpush3.bf16.msra.mxu1 %v208_v3 }
   0x8   :  { %197 = vmatmul.mubr.msk.f32.vlgmr.msra.gmra.mrb[0].mxu0 %vm31_vm0, %v15_v5 }
   0x9   :  { %203 = vmatmul.mubr.msk.f32.vlgmr.msra.gmra.mrb[0].mxu1 %vm31_vm0, %v19_v6  ;;  %199 = vmatprep.mubr.msk.f32.mxu0 %vm31_vm0, %v16_v7 }
   0xa   :  { %205 = vmatprep.mubr.msk.f32.mxu1 %vm31_vm0, %v20_v8 }
   0xc   :  { %200 = vmatmul.mubr.msk.f32.gmra.mrb[2].mxu0 %vm31_vm0, %v17_v9 }
   0xd   :  { %206 = vmatmul.mubr.msk.f32.gmra.mrb[2].mxu1 %vm31_vm0, %v21_v10 }
  0xdb   :  { %v198_v12 = vpop.f32.mrb[0].mxu0 }
  0xdc   :  { %v204_v13 = vpop.f32.mrb[0].mxu1  ;;  %v128_v14 = vadd.f32 %v198_v12, %v173_v11  ;;  %v122_v16 = vpop.f32.mrb[1].mxu0 }
  0xdd   :  { %v148_v15 = vadd.f32 %v204_v13, %v173_v11  ;;  %v142_v17 = vpop.f32.mrb[1].mxu1  ;;  %v123_v18 = vadd.f32 %v173_v11, %v122_v16 }
  0xde   :  { %v143_v19 = vadd.f32 %v173_v11, %v142_v17  ;;  %162 = vst [vmem:[%s302_s3 + $0x8] sm:$0xff] %v128_v14 }
  0xdf   :  { %166 = vst [vmem:[%s302_s3 + $0x28] sm:$0xff] %v148_v15  ;;  %161 = vst [vmem:[%s302_s3] sm:$0xff] %v123_v18  ;;  %v201_v20 = vpop.f32.mrb[2].mxu0 }
  0xe0   :  { %165 = vst [vmem:[%s302_s3 + $0x20] sm:$0xff] %v143_v19  ;;  %v207_v21 = vpop.f32.mrb[2].mxu1  ;;  %v138_v22 = vadd.f32 %v201_v20, %v173_v11  ;;  %v132_v24 = vpop.f32.mrb[3].mxu0 }
  0xe1   :  { %v158_v23 = vadd.f32 %v207_v21, %v173_v11  ;;  %v152_v25 = vpop.f32.mrb[3].mxu1  ;;  %v133_v26 = vadd.f32 %v173_v11, %v132_v24 }
  0xe2   :  { %v153_v27 = vadd.f32 %v173_v11, %v152_v25  ;;  %164 = vst [vmem:[%s302_s3 + $0x18] sm:$0xff] %v138_v22 }
  0xe3   :  { %168 = vst [vmem:[%s302_s3 + $0x38] sm:$0xff] %v158_v23  ;;  %163 = vst [vmem:[%s302_s3 + $0x10] sm:$0xff] %v133_v26 }
  0xe4   :  { %167 = vst [vmem:[%s302_s3 + $0x30] sm:$0xff] %v153_v27 }

// kernel: lstm_sentiment_forward.3
= control target key start
LH: loop header
LB: loop body
LE: loop exit
PB: predicated region body
PF: predicated region fallthrough
CT: control target
= control target key end

     0   :  { %vm24_vm0 = vcmask 261120   ;;  %v1255_v0 = vmov 0.0|0.0   ;;  %vm1256_vm1 = vmmov 0   ;;  %v1257_v4 = vmov 0.0   ;;  %s1258_s30 = smov 64   ;;  %s1259_s7 = smov 32   ;;  %s1462_s1 = inlined_call_operand.vmem [shape: f32[32,128], index: 1, kind: input, shape index: {}]   ;;  %s1463_s0 = inlined_call_operand.vmem [shape: f32[8,8,128], index: 0, kind: input, shape index: {}]   ;;  %s1464_s2 = inlined_call_operand.vmem [shape: f32[32,128], index: 2, kind: input, shape index: {}]   ;;  %s1465_s6 = inlined_call_operand.vmem [shape: f32[8,32], index: 6, kind: output, shape index: {2}]   ;;  %s1466_s5 = inlined_call_operand.vmem [shape: f32[8,32], index: 5, kind: output, shape index: {1}]   ;;  %s1467_s3 = inlined_call_operand.vmem [shape: f32[1,128], index: 3, kind: input, shape index: {}]   ;;  %s1468_s4 = inlined_call_operand.vmem [shape: f32[8,128], index: 4, kind: output, shape index: {0}]  }
   0x1   :  { %1131 = vmatprep.subr.bf16.mxu0 %v1255_v0  ;;  %v27_v1 = vld [vmem:[%s1462_s1] sm:$0xff]  ;;  %v28_v2 = vld [vmem:[%s1462_s1 + $0x8] sm:$0xff]  ;;  %v29_v3 = vld [vmem:[%s1462_s1 + $0x10] sm:$0xff]  ;;  %1040 = vmatprep.mubr.msk.f32.mxu0 %vm1256_vm1, %v1257_v4  ;;  %25 = vst.msk [vmem:[#allocation2] sm:$0xff] %vm24_vm0, %v1257_v4 }
   0x2   :  { %26 = vst.msk [vmem:[#allocation3] sm:$0xff] %vm24_vm0, %v1257_v4  ;;  %v1312_v5 = vpack.c.bf16 %v28_v2, %v27_v1  ;;  %v30_v6 = vld [vmem:[%s1462_s1 + $0x18] sm:$0xff]  ;;  %1137 = vmatprep.subr.bf16.mxu1 %v1255_v0  ;;  %1051 = vmatprep.mubr.msk.f32.mxu1 %vm1256_vm1, %v1257_v4  ;;  %v33_v9 = vld [vmem:[%s1463_s0] sm:$0xff]  ;;  %v964_v29 = vld [vmem:[%s1463_s0 + $0x8] sm:$0xff]  ;;  %s1260_s1 = smov 96  }
   0x3   :  { %v1321_v7 = vpack.c.bf16 %v30_v6, %v29_v3  ;;  %v967_v47 = vld [vmem:[%s1463_s0 + $0x10] sm:$0xff]  ;;  %v970_v2 = vld [vmem:[%s1463_s0 + $0x18] sm:$0xff] }
   0x4   :  { %1133 = vmatpush3.bf16.msra.mxu0 %v1312_v5  ;;  %1139 = vmatpush3.bf16.msra.mxu1 %v1312_v5 }
   0x5   :  { %1134 = vmatprep.subr.bf16.mxu0 %v1255_v0  ;;  %1140 = vmatprep.subr.bf16.mxu1 %v1255_v0 }
   0x8   :  { %1136 = vmatpush3.bf16.msra.mxu0 %v1321_v7  ;;  %v31_v8 = vld [vmem:[#allocation2] sm:$0xff]  ;;  %1142 = vmatpush3.bf16.msra.mxu1 %v1321_v7 }
   0x9   :  { %1143 = vmatprep.subr.bf16.mxu0 %v1255_v0  ;;  %1149 = vmatprep.subr.bf16.mxu1 %v1255_v0  ;;  %v32_v14 = vld [vmem:[#allocation3] sm:$0xff] }
   0xb   :  { %1041 = vmatmul.mubr.msk.f32.vlgmr.msra.gmra.mrb[0].mxu0 %vm24_vm0, %v31_v8 }
   0xc   :  { %1145 = vmatpush3.bf16.msra.mxu0 %v1312_v5  ;;  %1062 = vmatprep.mubr.msk.f32.mxu0 %vm1256_vm1, %v1257_v4 }
   0xd   :  { %1146 = vmatprep.subr.bf16.mxu0 %v1255_v0 }
  0x10   :  { %1148 = vmatpush3.bf16.msra.mxu0 %v1321_v7 }
  0x11   :  { %1155 = vmatprep.subr.bf16.mxu0 %v1255_v0 }
  0xde   :  { %v104_v10 = vpop.f32.mrb[0].mxu0 }
  0xdf   :  { %v108_v11 = vadd.f32 %v104_v10, %v33_v9  ;;  %v1042_v12 = vpop.f32.mrb[1].mxu0 }
  0xe1   :  { %1191 = vtanh.f32 %v108_v11  ;;  %v963_v15 = vmul.f32 -1.442695, %v108_v11 }
  0xe3   :  { %1193 = vpow2.f32 %v963_v15 }
  0xeb   :  { %v1192_v13 = vpop.eup %1191 }
  0xec   :  { %122 = vrot.lane.b32.xlu0 %v1192_v13, %s1258_s30 }
  0xed   :  { %v1194_v16 = vpop.eup %1193 }
  0xee   :  { %v112_v17 = vadd.f32 1.0, %v1194_v16 }
  0xf0   :  { %117 = vrot.lane.b32.xlu0 %v32_v14, %s1259_s7  ;;  %1195 = vrcp.f32 %v112_v17 }
  0xfa   :  { %v1196_v18 = vpop.eup %1195 }
 0x15e   :  { %v123_v19 = vpop.permute.xlu0 %122 }
 0x15f   :  { %v125_v20 = vmul.f32 %v1196_v18, %v123_v19 }
 0x161   :  { %127 = vrot.lane.b32.xlu1 %v125_v20, %s1259_s7 }
 0x162   :  { %v118_v21 = vpop.permute.xlu0 %117 }
 0x163   :  { %v120_v22 = vmul.f32 %v1196_v18, %v118_v21 }
 0x1d3   :  { %v128_v23 = vpop.permute.xlu1 %127 }
 0x1d4   :  { %v130_v24 = vadd.f32 %v128_v23, %v120_v22  ;;  %v973_v23 = vld [vmem:[%s1463_s0 + $0x20] sm:$0xff] }
 0x1d6   :  { %1197 = vtanh.f32 %v130_v24 }
 0x1e0   :  { %v1198_v25 = vpop.eup %1197 }
 0x1e1   :  { %133 = vrot.lane.b32.xlu1 %v1198_v25, %s1258_s30 }
 0x253   :  { %v134_v26 = vpop.permute.xlu1 %133 }
 0x254   :  { %v136_v27 = vmul.f32 %v1196_v18, %v134_v26 }
 0x256   :  { %140 = vrot.lane.b32.xlu0 %v136_v27, %s1259_s7 }
 0x2c8   :  { %v141_v28 = vpop.permute.xlu0 %140 }
 0x2c9   :  { %1052 = vmatmul.mubr.msk.f32.vlgmr.msra.gmra.mrb[0].mxu1 %vm24_vm0, %v141_v28 }
 0x2ca   :  { %1151 = vmatpush3.bf16.msra.mxu1 %v1312_v5  ;;  %1073 = vmatprep.mubr.msk.f32.mxu1 %vm1256_vm1, %v1257_v4 }
 0x2cb   :  { %1152 = vmatprep.subr.bf16.mxu1 %v1255_v0 }
 0x2ce   :  { %1154 = vmatpush3.bf16.msra.mxu1 %v1321_v7 }
 0x2cf   :  { %1161 = vmatprep.subr.bf16.mxu1 %v1255_v0 }
 0x39c   :  { %v210_v30 = vpop.f32.mrb[0].mxu1 }
 0x39d   :  { %v214_v31 = vadd.f32 %v964_v29, %v210_v30  ;;  %v1053_v32 = vpop.f32.mrb[1].mxu1 }
 0x39f   :  { %1199 = vtanh.f32 %v214_v31  ;;  %v966_v34 = vmul.f32 -1.442695, %v214_v31 }
 0x3a1   :  { %1201 = vpow2.f32 %v966_v34 }
 0x3a9   :  { %v1200_v33 = vpop.eup %1199 }
 0x3aa   :  { %224 = vrot.lane.b32.xlu1 %v1200_v33, %s1258_s30 }
 0x3ab   :  { %v1202_v35 = vpop.eup %1201 }
 0x3ac   :  { %v218_v36 = vadd.f32 1.0, %v1202_v35 }
 0x3ae   :  { %1203 = vrcp.f32 %v218_v36 }
 0x3b8   :  { %v1204_v37 = vpop.eup %1203 }
 0x3b9   :  { %v222_v40 = vmul.f32 %v1204_v37, %v130_v24 }
 0x41c   :  { %v225_v38 = vpop.permute.xlu1 %224 }
 0x41d   :  { %v227_v39 = vmul.f32 %v1204_v37, %v225_v38 }
 0x41f   :  { %229 = vrot.lane.b32.xlu0 %v227_v39, %s1259_s7 }
 0x491   :  { %v230_v41 = vpop.permute.xlu0 %229 }
 0x492   :  { %v232_v42 = vadd.f32 %v230_v41, %v222_v40  ;;  %v976_v41 = vld [vmem:[%s1463_s0 + $0x28] sm:$0xff] }
 0x494   :  { %1205 = vtanh.f32 %v232_v42 }
 0x49e   :  { %v1206_v43 = vpop.eup %1205 }
 0x49f   :  { %235 = vrot.lane.b32.xlu1 %v1206_v43, %s1258_s30 }
 0x511   :  { %v236_v44 = vpop.permute.xlu1 %235 }
 0x512   :  { %v238_v45 = vmul.f32 %v1204_v37, %v236_v44 }
 0x514   :  { %242 = vrot.lane.b32.xlu0 %v238_v45, %s1259_s7 }
 0x586   :  { %v243_v46 = vpop.permute.xlu0 %242 }
 0x587   :  { %1063 = vmatmul.mubr.msk.f32.vlgmr.msra.gmra.mrb[2].mxu0 %vm24_vm0, %v243_v46 }
 0x588   :  { %1157 = vmatpush3.bf16.msra.mxu0 %v1312_v5  ;;  %1084 = vmatprep.mubr.msk.f32.mxu0 %vm1256_vm1, %v1257_v4 }
 0x589   :  { %1158 = vmatprep.subr.bf16.mxu0 %v1255_v0 }
 0x58c   :  { %1160 = vmatpush3.bf16.msra.mxu0 %v1321_v7 }
 0x58d   :  { %1167 = vmatprep.subr.bf16.mxu0 %v1255_v0 }
 0x65a   :  { %v312_v48 = vpop.f32.mrb[2].mxu0 }
 0x65b   :  { %v316_v49 = vadd.f32 %v967_v47, %v312_v48  ;;  %v1064_v50 = vpop.f32.mrb[3].mxu0 }
 0x65d   :  { %1207 = vtanh.f32 %v316_v49  ;;  %v969_v52 = vmul.f32 -1.442695, %v316_v49 }
 0x65f   :  { %1209 = vpow2.f32 %v969_v52 }
 0x667   :  { %v1208_v51 = vpop.eup %1207 }
 0x668   :  { %326 = vrot.lane.b32.xlu1 %v1208_v51, %s1258_s30 }
 0x669   :  { %v1210_v53 = vpop.eup %1209 }
 0x66a   :  { %v320_v54 = vadd.f32 1.0, %v1210_v53 }
 0x66c   :  { %1211 = vrcp.f32 %v320_v54 }
 0x676   :  { %v1212_v55 = vpop.eup %1211 }
 0x677   :  { %v324_v58 = vmul.f32 %v1212_v55, %v232_v42 }
 0x6da   :  { %v327_v56 = vpop.permute.xlu1 %326 }
 0x6db   :  { %v329_v57 = vmul.f32 %v1212_v55, %v327_v56 }
 0x6dd   :  { %331 = vrot.lane.b32.xlu0 %v329_v57, %s1259_s7  ;;  %v979_v57 = vld [vmem:[%s1463_s0 + $0x30] sm:$0xff] }
 0x74f   :  { %v332_v59 = vpop.permute.xlu0 %331 }
 0x750   :  { %v334_v60 = vadd.f32 %v332_v59, %v324_v58 }
 0x752   :  { %1213 = vtanh.f32 %v334_v60 }
 0x75c   :  { %v1214_v61 = vpop.eup %1213 }
 0x75d   :  { %337 = vrot.lane.b32.xlu1 %v1214_v61, %s1258_s30 }
 0x7cf   :  { %v338_v62 = vpop.permute.xlu1 %337 }
 0x7d0   :  { %v340_v63 = vmul.f32 %v1212_v55, %v338_v62 }
 0x7d2   :  { %344 = vrot.lane.b32.xlu0 %v340_v63, %s1259_s7 }
 0x844   :  { %v345_v1 = vpop.permute.xlu0 %344 }
 0x845   :  { %1074 = vmatmul.mubr.msk.f32.vlgmr.msra.gmra.mrb[2].mxu1 %vm24_vm0, %v345_v1 }
 0x846   :  { %1163 = vmatpush3.bf16.msra.mxu1 %v1312_v5  ;;  %1095 = vmatprep.mubr.msk.f32.mxu1 %vm1256_vm1, %v1257_v4 }
 0x847   :  { %1164 = vmatprep.subr.bf16.mxu1 %v1255_v0 }
 0x84a   :  { %1166 = vmatpush3.bf16.msra.mxu1 %v1321_v7 }
 0x84b   :  { %1173 = vmatprep.subr.bf16.mxu1 %v1255_v0 }
 0x918   :  { %v414_v3 = vpop.f32.mrb[2].mxu1 }
 0x919   :  { %v418_v6 = vadd.f32 %v970_v2, %v414_v3  ;;  %v1075_v8 = vpop.f32.mrb[3].mxu1 }
 0x91b   :  { %1215 = vtanh.f32 %v418_v6  ;;  %v972_v10 = vmul.f32 -1.442695, %v418_v6 }
 0x91d   :  { %1217 = vpow2.f32 %v972_v10 }
 0x925   :  { %v1216_v9 = vpop.eup %1215 }
 0x926   :  { %428 = vrot.lane.b32.xlu1 %v1216_v9, %s1258_s30 }
 0x927   :  { %v1218_v11 = vpop.eup %1217 }
 0x928   :  { %v422_v12 = vadd.f32 1.0, %v1218_v11 }
 0x92a   :  { %1219 = vrcp.f32 %v422_v12 }
 0x934   :  { %v1220_v13 = vpop.eup %1219 }
 0x935   :  { %v426_v16 = vmul.f32 %v1220_v13, %v334_v60 }
 0x998   :  { %v429_v14 = vpop.permute.xlu1 %428 }
 0x999   :  { %v431_v15 = vmul.f32 %v1220_v13, %v429_v14  ;;  %v982_v14 = vld [vmem:[%s1463_s0 + $0x38] sm:$0xff] }
 0x99b   :  { %433 = vrot.lane.b32.xlu0 %v431_v15, %s1259_s7 }
 0xa0d   :  { %v434_v17 = vpop.permute.xlu0 %433 }
 0xa0e   :  { %v436_v18 = vadd.f32 %v434_v17, %v426_v16 }
 0xa10   :  { %1221 = vtanh.f32 %v436_v18 }
 0xa1a   :  { %v1222_v19 = vpop.eup %1221 }
 0xa1b   :  { %439 = vrot.lane.b32.xlu1 %v1222_v19, %s1258_s30 }
 0xa8d   :  { %v440_v20 = vpop.permute.xlu1 %439 }
 0xa8e   :  { %v442_v21 = vmul.f32 %v1220_v13, %v440_v20 }
 0xa90   :  { %446 = vrot.lane.b32.xlu0 %v442_v21, %s1259_s7 }
 0xb02   :  { %v447_v22 = vpop.permute.xlu0 %446 }
 0xb03   :  { %1085 = vmatmul.mubr.msk.f32.vlgmr.msra.gmra.mrb[4].mxu0 %vm24_vm0, %v447_v22 }
 0xb04   :  { %1169 = vmatpush3.bf16.msra.mxu0 %v1312_v5  ;;  %1106 = vmatprep.mubr.msk.f32.mxu0 %vm1256_vm1, %v1257_v4 }
 0xb05   :  { %1170 = vmatprep.subr.bf16.mxu0 %v1255_v0 }
 0xb08   :  { %1172 = vmatpush3.bf16.msra.mxu0 %v1321_v7 }
 0xb09   :  { %1179 = vmatprep.subr.bf16.mxu0 %v1255_v0 }
 0xbd6   :  { %v516_v24 = vpop.f32.mrb[4].mxu0 }
 0xbd7   :  { %v520_v25 = vadd.f32 %v973_v23, %v516_v24  ;;  %v1086_v26 = vpop.f32.mrb[5].mxu0 }
 0xbd9   :  { %1223 = vtanh.f32 %v520_v25  ;;  %v975_v28 = vmul.f32 -1.442695, %v520_v25 }
 0xbdb   :  { %1225 = vpow2.f32 %v975_v28  ;;  %v866_v28 = vld [vmem:[%s1464_s2] sm:$0xff] }
 0xbe3   :  { %v1224_v27 = vpop.eup %1223 }
 0xbe4   :  { %530 = vrot.lane.b32.xlu1 %v1224_v27, %s1258_s30 }
 0xbe5   :  { %v1226_v29 = vpop.eup %1225 }
 0xbe6   :  { %v524_v30 = vadd.f32 1.0, %v1226_v29  ;;  %v867_v29 = vld [vmem:[%s1464_s2 + $0x8] sm:$0xff] }
 0xbe8   :  { %1227 = vrcp.f32 %v524_v30  ;;  %v868_v30 = vld [vmem:[%s1464_s2 + $0x10] sm:$0xff] }
 0xbf2   :  { %v1228_v31 = vpop.eup %1227 }
 0xbf3   :  { %v528_v34 = vmul.f32 %v1228_v31, %v436_v18 }
 0xc56   :  { %v531_v32 = vpop.permute.xlu1 %530 }
 0xc57   :  { %v533_v33 = vmul.f32 %v1228_v31, %v531_v32  ;;  %v869_v32 = vld [vmem:[%s1464_s2 + $0x18] sm:$0xff] }
 0xc59   :  { %535 = vrot.lane.b32.xlu0 %v533_v33, %s1259_s7  ;;  %v1183_v33 = vpack.c.bf16 %v869_v32, %v868_v30 }
 0xccb   :  { %v536_v35 = vpop.permute.xlu0 %535 }
 0xccc   :  { %v538_v36 = vadd.f32 %v536_v35, %v528_v34 }
 0xcce   :  { %1229 = vtanh.f32 %v538_v36 }
 0xcd8   :  { %v1230_v37 = vpop.eup %1229 }
 0xcd9   :  { %541 = vrot.lane.b32.xlu1 %v1230_v37, %s1258_s30 }
 0xd4b   :  { %v542_v38 = vpop.permute.xlu1 %541 }
 0xd4c   :  { %v544_v39 = vmul.f32 %v1228_v31, %v542_v38  ;;  %v1180_v31 = vpack.c.bf16 %v867_v29, %v866_v28 }
 0xd4e   :  { %548 = vrot.lane.b32.xlu0 %v544_v39, %s1259_s7 }
 0xdc0   :  { %v549_v40 = vpop.permute.xlu0 %548 }
 0xdc1   :  { %1096 = vmatmul.mubr.msk.f32.vlgmr.msra.gmra.mrb[4].mxu1 %vm24_vm0, %v549_v40 }
 0xdc2   :  { %1175 = vmatpush3.bf16.msra.mxu1 %v1312_v5  ;;  %1117 = vmatprep.mubr.msk.f32.mxu1 %vm1256_vm1, %v1257_v4 }
 0xdc3   :  { %1176 = vmatprep.subr.bf16.mxu1 %v1255_v0 }
 0xdc6   :  { %1178 = vmatpush3.bf16.msra.mxu1 %v1321_v7 }
 0xe94   :  { %v618_v42 = vpop.f32.mrb[4].mxu1 }
 0xe95   :  { %v622_v43 = vadd.f32 %v976_v41, %v618_v42  ;;  %v1097_v44 = vpop.f32.mrb[5].mxu1 }
 0xe97   :  { %1231 = vtanh.f32 %v622_v43  ;;  %v978_v46 = vmul.f32 -1.442695, %v622_v43 }
 0xe99   :  { %1233 = vpow2.f32 %v978_v46 }
 0xea1   :  { %v1232_v45 = vpop.eup %1231 }
 0xea2   :  { %632 = vrot.lane.b32.xlu1 %v1232_v45, %s1258_s30 }
 0xea3   :  { %v1234_v5 = vpop.eup %1233 }
 0xea4   :  { %v626_v47 = vadd.f32 1.0, %v1234_v5 }
 0xea6   :  { %1235 = vrcp.f32 %v626_v47 }
 0xeb0   :  { %v1236_v48 = vpop.eup %1235 }
 0xeb1   :  { %v630_v7 = vmul.f32 %v1236_v48, %v538_v36 }
 0xf14   :  { %v633_v49 = vpop.permute.xlu1 %632 }
 0xf15   :  { %v635_v50 = vmul.f32 %v1236_v48, %v633_v49 }
 0xf17   :  { %637 = vrot.lane.b32.xlu0 %v635_v50, %s1259_s7 }
 0xf89   :  { %v638_v51 = vpop.permute.xlu0 %637 }
 0xf8a   :  { %v640_v52 = vadd.f32 %v638_v51, %v630_v7 }
 0xf8c   :  { %1237 = vtanh.f32 %v640_v52 }
 0xf96   :  { %v1238_v53 = vpop.eup %1237 }
 0xf97   :  { %643 = vrot.lane.b32.xlu1 %v1238_v53, %s1258_s30 }
0x1009   :  { %v644_v54 = vpop.permute.xlu1 %643 }
0x100a   :  { %v646_v55 = vmul.f32 %v1236_v48, %v644_v54 }
0x100c   :  { %650 = vrot.lane.b32.xlu0 %v646_v55, %s1259_s7 }
0x107e   :  { %v651_v56 = vpop.permute.xlu0 %650 }
0x107f   :  { %1107 = vmatmul.mubr.msk.f32.vlgmr.msra.gmra.mrb[6].mxu0 %vm24_vm0, %v651_v56 }
0x1080   :  { %1128 = vmatprep.mubr.msk.f32.mxu0 %vm1256_vm1, %v1257_v4  ;;  %1181 = vmatpush3.bf16.msra.mxu0 %v1180_v31 }
0x1081   :  { %1182 = vmatprep.subr.bf16.mxu0 %v1255_v0  ;;  %v985_v0 = vld [vmem:[%s1467_s3] ss:$0 sm:$0xff] }
0x1084   :  { %1184 = vmatpush3.bf16.msra.mxu0 %v1183_v33 }
0x1152   :  { %v720_v58 = vpop.f32.mrb[6].mxu0 }
0x1153   :  { %v724_v59 = vadd.f32 %v979_v57, %v720_v58  ;;  %v1108_v60 = vpop.f32.mrb[7].mxu0 }
0x1155   :  { %1239 = vtanh.f32 %v724_v59  ;;  %v981_v62 = vmul.f32 -1.442695, %v724_v59 }
0x1157   :  { %1241 = vpow2.f32 %v981_v62 }
0x115f   :  { %v1240_v61 = vpop.eup %1239 }
0x1160   :  { %734 = vrot.lane.b32.xlu1 %v1240_v61, %s1258_s30 }
0x1161   :  { %v1242_v63 = vpop.eup %1241 }
0x1162   :  { %v728_v1 = vadd.f32 1.0, %v1242_v63 }
0x1164   :  { %1243 = vrcp.f32 %v728_v1 }
0x116e   :  { %v1244_v2 = vpop.eup %1243 }
0x116f   :  { %v732_v4 = vmul.f32 %v1244_v2, %v640_v52 }
0x11d2   :  { %v735_v3 = vpop.permute.xlu1 %734 }
0x11d3   :  { %v737_v6 = vmul.f32 %v1244_v2, %v735_v3 }
0x11d5   :  { %739 = vrot.lane.b32.xlu0 %v737_v6, %s1259_s7 }
0x1247   :  { %v740_v8 = vpop.permute.xlu0 %739 }
0x1248   :  { %v742_v9 = vadd.f32 %v740_v8, %v732_v4 }
0x124a   :  { %1245 = vtanh.f32 %v742_v9 }
0x1254   :  { %v1246_v10 = vpop.eup %1245 }
0x1255   :  { %745 = vrot.lane.b32.xlu1 %v1246_v10, %s1258_s30 }
0x12c7   :  { %v746_v11 = vpop.permute.xlu1 %745 }
0x12c8   :  { %v748_v12 = vmul.f32 %v1244_v2, %v746_v11 }
0x12ca   :  { %752 = vrot.lane.b32.xlu0 %v748_v12, %s1259_s7 }
0x133c   :  { %v753_v13 = vpop.permute.xlu0 %752 }
0x133d   :  { %1118 = vmatmul.mubr.msk.f32.vlgmr.msra.gmra.mrb[6].mxu1 %vm24_vm0, %v753_v13 }
0x1410   :  { %v822_v15 = vpop.f32.mrb[6].mxu1 }
0x1411   :  { %v826_v16 = vadd.f32 %v982_v14, %v822_v15  ;;  %v1119_v17 = vpop.f32.mrb[7].mxu1 }
0x1413   :  { %1247 = vtanh.f32 %v826_v16  ;;  %v984_v19 = vmul.f32 -1.442695, %v826_v16 }
0x1415   :  { %1249 = vpow2.f32 %v984_v19 }
0x141d   :  { %v1248_v18 = vpop.eup %1247 }
0x141e   :  { %836 = vrot.lane.b32.xlu1 %v1248_v18, %s1258_s30 }
0x141f   :  { %v1250_v20 = vpop.eup %1249 }
0x1420   :  { %v830_v21 = vadd.f32 1.0, %v1250_v20 }
0x1422   :  { %1251 = vrcp.f32 %v830_v21 }
0x142c   :  { %v1252_v22 = vpop.eup %1251 }
0x142d   :  { %v834_v25 = vmul.f32 %v1252_v22, %v742_v9 }
0x1490   :  { %v837_v23 = vpop.permute.xlu1 %836 }
0x1491   :  { %v839_v24 = vmul.f32 %v1252_v22, %v837_v23 }
0x1493   :  { %841 = vrot.lane.b32.xlu0 %v839_v24, %s1259_s7 }
0x1505   :  { %v842_v26 = vpop.permute.xlu0 %841 }
0x1506   :  { %v844_v27 = vadd.f32 %v842_v26, %v834_v25 }
0x1508   :  { %1253 = vtanh.f32 %v844_v27 }
0x1512   :  { %v1254_v34 = vpop.eup %1253 }
0x1513   :  { %847 = vrot.lane.b32.xlu1 %v1254_v34, %s1258_s30 }
0x1517   :  { %857 = vrot.lane.b32.xlu1 %v844_v27, %s1260_s1 }
0x1585   :  { %v848_v35 = vpop.permute.xlu1 %847 }
0x1586   :  { %v850_v36 = vmul.f32 %v1252_v22, %v848_v35 }
0x1588   :  { %852 = vrot.lane.b32.xlu0 %v850_v36, %s1259_s7 }
0x1589   :  { %v858_v37 = vpop.permute.xlu1 %857 }
0x158a   :  { %860 = vst.msk [vmem:[#allocation3] sm:$0xff] %vm24_vm0, %v858_v37  ;;  %865 = vst.msk [vmem:[%s1465_s6] sm:$0xff] %vm24_vm0, %v858_v37 }
0x15fa   :  { %v853_v38 = vpop.permute.xlu0 %852 }
0x15fb   :  { %855 = vst.msk [vmem:[#allocation2] sm:$0xff] %vm24_vm0, %v853_v38  ;;  %864 = vst.msk [vmem:[%s1466_s5] sm:$0xff] %vm24_vm0, %v853_v38  ;;  %1129 = vmatmul.mubr.msk.f32.vlgmr.msra.gmra.mrb[8].mxu0 %vm24_vm0, %v853_v38 }
0x16ce   :  { %v945_v39 = vpop.f32.mrb[8].mxu0 }
0x16cf   :  { %v946_v40 = vadd.f32 %v985_v0, %v945_v39  ;;  %v1130_v41 = vpop.f32.mrb[9].mxu0 }
0x16d1   :  { %949 = vst [vmem:[%s1468_s4] sm:$0xff] %v946_v40 }

</bundles_post_ra>
